<compile_context>
chip_gen: v7x
topology: tpu7x:2x2x1
jax: 0.10.0
libtpu: 0.0.40
codegen_flags: <defaults>
</compile_context>

<pallas_src>
import math

import jax
import jax.numpy as jnp
from jax.experimental import pallas as pl
from jax.experimental.pallas import tpu as pltpu


def _elu(x):
    # ELU(alpha=1): x if x > 0 else exp(x) - 1   (computed in f32)
    return jnp.where(x > 0, x, jnp.exp(x) - 1.0)


def _round_up(x, m):
    return ((x + m - 1) // m) * m


def _choose_tile(batch, cap=2048):
    """Pick a batch tile: multiple of 8, <= cap, minimal padding, and >=2 grid steps
    whenever the (padded) batch allows it (so v7x's two TensorCores both get work)."""
    n_tiles = max(1, math.ceil(batch / cap))
    tb = _round_up(math.ceil(batch / n_tiles), 8)
    pb = _round_up(batch, tb)
    if pb // tb < 2 and tb > 8:
        tb = max(8, _round_up(math.ceil(batch / 2), 8))
        pb = _round_up(batch, tb)
    return tb, pb


# ----------------------------------------------------------------------------- kernel


def _encoder_kernel(obs_ref, tgt_ref, w0o_ref, w0t_ref, b0_ref,
                    w1_ref, b1_ref, w2_ref, b2_ref, out_ref):
    """obs:(TB,in) tgt:(TB,cond) -> fused hidden (TB,2h) x2 -> slab (TB, 2*out).

    slab = [mu_prior + mu_post | mu_prior]
    Matmul operands are in the weights' dtype (bf16 or f32); accumulation, bias adds
    and ELU are f32.
    """
    h = (jnp.dot(obs_ref[...], w0o_ref[...], preferred_element_type=jnp.float32)
         + jnp.dot(tgt_ref[...], w0t_ref[...], preferred_element_type=jnp.float32)
         + b0_ref[...])
    h = _elu(h).astype(w1_ref.dtype)
    h = _elu(jnp.dot(h, w1_ref[...], preferred_element_type=jnp.float32) + b1_ref[...])
    h = h.astype(w2_ref.dtype)
    out_ref[...] = (jnp.dot(h, w2_ref[...], preferred_element_type=jnp.float32)
                    + b2_ref[...]).astype(out_ref.dtype)


# ----------------------------------------------------------------------------- wrapper


def learnable_prior_encoder_forward(obs, target, noise, fused, *, fix_var,
                                    compute_dtype=jnp.bfloat16):
    """Forward pass of LearnablePriorEncoder as a single batch-tiled Pallas call.

    Returns (latent, mu_prior + mu_post, mu_prior), each of shape (B, out), in f32.
    """
    B, in_size = obs.shape
    cond_size = target.shape[1]
    h2 = fused["w0_obs"].shape[1]            # 2 * hidden
    out2 = fused["w2"].shape[1]              # 2 * output_size
    out_size = out2 // 2
    std = float(fix_var)                     # exp(0.5 * (2*log(fix_var))) == fix_var

    # Matmul operands in compute_dtype; biases stay f32 (VPU/EUP math is f32 everywhere).
    obs_c = obs.astype(compute_dtype)
    tgt_c = target.astype(compute_dtype)
    w0o = fused["w0_obs"].astype(compute_dtype)
    w0t = fused["w0_tgt"].astype(compute_dtype)
    w1 = fused["w1"].astype(compute_dtype)
    w2 = fused["w2"].astype(compute_dtype)
    b0 = fused["b0"].astype(jnp.float32)
    b1 = fused["b1"].astype(jnp.float32)
    b2 = fused["b2"].astype(jnp.float32)

    tb, pb = _choose_tile(B)
    if pb != B:
        obs_c = jnp.pad(obs_c, ((0, pb - B), (0, 0)))
        tgt_c = jnp.pad(tgt_c, ((0, pb - B), (0, 0)))

    def tiled(feat):          # activation / output tiles: march over batch
        return pl.BlockSpec((tb, feat), lambda i: (i, 0))

    def pinned(shape):        # weights / biases: VMEM-resident across all grid steps
        return pl.BlockSpec(shape, lambda i: (0, 0))

    act_bytes = jnp.dtype(compute_dtype).itemsize
    wgt_elems = in_size * h2 + cond_size * h2 + h2 * h2 + h2 * out2
    cost = pl.CostEstimate(
        flops=int(2 * pb * (in_size * h2 + cond_size * h2 + h2 * h2 + h2 * out2)),
        transcendentals=int(pb * 2 * h2),
        bytes_accessed=int(pb * (in_size + cond_size) * act_bytes
                           + pb * out2 * 4
                           + wgt_elems * act_bytes
                           + (2 * h2 + out2) * 4),
    )

    slab = pl.pallas_call(
        _encoder_kernel,
        out_shape=jax.ShapeDtypeStruct((pb, out2), jnp.float32),
        grid=(pb // tb,),
        in_specs=[
            tiled(in_size),                              # obs
            tiled(cond_size),                            # target
            pinned((in_size, h2)),                       # w0_obs
            pinned((cond_size, h2)),                     # w0_tgt
            pinned((1, h2)),                             # b0
            pinned((h2, h2)), pinned((1, h2)),           # fused layer 1
            pinned((h2, out2)), pinned((1, out2)),       # fused layer 2 (slab projection)
        ],
        out_specs=tiled(out2),
        compiler_params=pltpu.CompilerParams(dimension_semantics=("parallel",)),
        cost_estimate=cost,
    )(obs_c, tgt_c, w0o, w0t, b0, w1, b1, w2, b2)

    mu_sum = slab[:B, 0:out_size]
    mu_prior = slab[:B, out_size:out2]
    # Reparameterization: one wrapper add (fuses with downstream consumers).
    latent = mu_sum + noise.astype(jnp.float32) * std
    return latent, mu_sum, mu_prior


# ----------------------------------------------------------------------------- params


def _linear_init(key, fan_in, fan_out):
    """Deterministic PyTorch-style nn.Linear init: U(-1/sqrt(fan_in), 1/sqrt(fan_in))."""
    kw, kb = jax.random.split(key)
    bound = 1.0 / math.sqrt(fan_in)
    w = jax.random.uniform(kw, (fan_in, fan_out), jnp.float32, -bound, bound)
    b = jax.random.uniform(kb, (1, fan_out), jnp.float32, -bound, bound)
    return w, b


def make_params(key, input_size, condition_size, output_size, hidden):
    """Raw per-network parameters (weights stored as (in, out) so forward is x @ W + b)."""
    keys = jax.random.split(key, 6)
    pw0, pb0 = _linear_init(keys[0], input_size, hidden)
    pw1, pb1 = _linear_init(keys[1], hidden, hidden)
    pw2, pb2 = _linear_init(keys[2], hidden, output_size)
    qw0, qb0 = _linear_init(keys[3], input_size + condition_size, hidden)
    qw1, qb1 = _linear_init(keys[4], hidden, hidden)
    qw2, qb2 = _linear_init(keys[5], hidden, output_size)
    return {
        "pw0": pw0, "pb0": pb0, "pw1": pw1, "pb1": pb1, "pw2": pw2, "pb2": pb2,
        "qw0": qw0, "qb0": qb0, "qw1": qw1, "qb1": qb1, "qw2": qw2, "qb2": qb2,
    }


def fuse_params(p, input_size, condition_size, output_size, hidden):
    """Host-side block-diagonal fusion of prior + posterior MLPs (done once).

    Layer 0 is split row-wise so the kernel never needs a concatenated input:
        h = obs @ w0_obs + tgt @ w0_tgt + b0
    Layer 2 emits the 2*out slab  [mu_prior + mu_post | mu_prior]  directly.
    """
    h2 = 2 * hidden
    # Layer 0 (rows split between obs and target; prior only sees obs).
    w0_obs = jnp.zeros((input_size, h2), jnp.float32)
    w0_obs = w0_obs.at[:, :hidden].set(p["pw0"])
    w0_obs = w0_obs.at[:, hidden:].set(p["qw0"][:input_size])
    w0_tgt = jnp.zeros((condition_size, h2), jnp.float32)
    w0_tgt = w0_tgt.at[:, hidden:].set(p["qw0"][input_size:])
    b0 = jnp.concatenate([p["pb0"], p["qb0"]], axis=-1)
    # Layer 1: block-diagonal.
    w1 = jnp.zeros((h2, h2), jnp.float32)
    w1 = w1.at[:hidden, :hidden].set(p["pw1"])
    w1 = w1.at[hidden:, hidden:].set(p["qw1"])
    b1 = jnp.concatenate([p["pb1"], p["qb1"]], axis=-1)
    # Layer 2: slab [mu_sum | mu_prior].
    w2 = jnp.zeros((h2, 2 * output_size), jnp.float32)
    w2 = w2.at[:hidden, 0:output_size].set(p["pw2"])
    w2 = w2.at[hidden:, 0:output_size].set(p["qw2"])
    w2 = w2.at[:hidden, output_size:].set(p["pw2"])
    b2 = jnp.concatenate([p["pb2"] + p["qb2"], p["pb2"]], axis=-1)
    return {"w0_obs": w0_obs, "w0_tgt": w0_tgt, "b0": b0,
            "w1": w1, "b1": b1, "w2": w2, "b2": b2}


# ----------------------------------------------------------------------------- reference


def reference_forward(obs, target, noise, params, *, fix_var):
    """Plain-JAX reference mirroring the PyTorch module (for a sanity check)."""
    def mlp(x, w0, b0, w1, b1, w2, b2):
        h = _elu(x @ w0 + b0)
        h = _elu(h @ w1 + b1)
        return h @ w2 + b2

    mu_prior = mlp(obs, params["pw0"], params["pb0"], params["pw1"], params["pb1"],
                   params["pw2"], params["pb2"])
    mu_post = mlp(jnp.concatenate([obs, target], axis=-1), params["qw0"], params["qb0"],
                  params["qw1"], params["qb1"], params["qw2"], params["qb2"])
    log_var = 2.0 * math.log(fix_var)
    std = math.exp(0.5 * log_var)
    latent = (mu_prior + mu_post) + noise * std
    return latent, mu_prior + mu_post, mu_prior


# ----------------------------------------------------------------------------- main


if __name__ == "__main__":
    # Small shapes consistent with the module's forward.
    input_size = 32        # normalized_observation feature dim
    condition_size = 32    # normalized_target feature dim
    output_size = 16       # latent dim
    hidden = 64            # encoder_hidden_layer_size (encoder_hidden_layer_num=2, ELU)
    fix_var = 0.3          # fix_var path of the module

    key = jax.random.PRNGKey(0)
    k_params, k_obs, k_tgt, k_noise = jax.random.split(key, 4)

    raw = make_params(k_params, input_size, condition_size, output_size, hidden)
    fused = fuse_params(raw, input_size, condition_size, output_size, hidden)

    ok = True
    for batch in (2, 100):
        ko, kt, kn = jax.random.split(jax.random.fold_in(key, batch), 3)
        obs = jax.random.normal(ko, (batch, input_size), jnp.float32)
        target = jax.random.normal(kt, (batch, condition_size), jnp.float32)
        # torch.randn_like(mu) equivalent, generated host-side (kept out of the kernel).
        noise = jax.random.normal(kn, (batch, output_size), jnp.float32)

        ref_latent, ref_mu_sum, ref_mu_prior = reference_forward(
            obs, target, noise, raw, fix_var=fix_var)

        # Exact-parity f32 path.
        latent, mu_sum, mu_prior = learnable_prior_encoder_forward(
            obs, target, noise, fused, fix_var=fix_var, compute_dtype=jnp.float32)
        jax.block_until_ready((latent, mu_sum, mu_prior))
        ok &= bool(jnp.allclose(latent, ref_latent, atol=1e-5))
        ok &= bool(jnp.allclose(mu_sum, ref_mu_sum, atol=1e-5))
        ok &= bool(jnp.allclose(mu_prior, ref_mu_prior, atol=1e-5))

        # Default bf16 matmul path (f32 accumulation + f32 ELU): relaxed parity.
        latent_b, mu_sum_b, mu_prior_b = learnable_prior_encoder_forward(
            obs, target, noise, fused, fix_var=fix_var, compute_dtype=jnp.bfloat16)
        jax.block_until_ready((latent_b, mu_sum_b, mu_prior_b))
        ok &= bool(jnp.allclose(latent_b, ref_latent, atol=1e-1, rtol=5e-2))
        ok &= bool(jnp.allclose(mu_sum_b, ref_mu_sum, atol=1e-1, rtol=5e-2))
        ok &= bool(jnp.allclose(mu_prior_b, ref_mu_prior, atol=1e-1, rtol=5e-2))

    assert ok
    print("KERNEL_OK")
</pallas_src>

<mosaic_0001>
module attributes {stable_mosaic.version = 11 : i64} {
  func.func @_encoder_kernel(%arg0: i32, %arg1: memref<8x32xf32, #tpu.memory_space<vmem>>, %arg2: memref<8x32xf32, #tpu.memory_space<vmem>>, %arg3: memref<32x128xf32, #tpu.memory_space<vmem>>, %arg4: memref<32x128xf32, #tpu.memory_space<vmem>>, %arg5: memref<1x128xf32, #tpu.memory_space<vmem>>, %arg6: memref<128x128xf32, #tpu.memory_space<vmem>>, %arg7: memref<1x128xf32, #tpu.memory_space<vmem>>, %arg8: memref<128x32xf32, #tpu.memory_space<vmem>>, %arg9: memref<1x32xf32, #tpu.memory_space<vmem>>, %arg10: memref<8x32xf32, #tpu.memory_space<vmem>>) attributes {dimension_semantics = [#tpu.dimension_semantics<parallel>], iteration_bounds = array<i64: 1>, scalar_prefetch = 0 : i64, scratch_operands = 0 : i64, tpu.core_type = #tpu.core_type<tc>, window_params = [{transform_indices = @transform_0, window_bounds = array<i64: 8, 32>}, {transform_indices = @transform_1, window_bounds = array<i64: 8, 32>}, {pipeline_mode = #tpu.pipeline_mode<synchronous>, transform_indices = @transform_2, window_bounds = array<i64: 32, 128>}, {pipeline_mode = #tpu.pipeline_mode<synchronous>, transform_indices = @transform_3, window_bounds = array<i64: 32, 128>}, {pipeline_mode = #tpu.pipeline_mode<synchronous>, transform_indices = @transform_4, window_bounds = array<i64: 1, 128>}, {pipeline_mode = #tpu.pipeline_mode<synchronous>, transform_indices = @transform_5, window_bounds = array<i64: 128, 128>}, {pipeline_mode = #tpu.pipeline_mode<synchronous>, transform_indices = @transform_6, window_bounds = array<i64: 1, 128>}, {pipeline_mode = #tpu.pipeline_mode<synchronous>, transform_indices = @transform_7, window_bounds = array<i64: 128, 32>}, {pipeline_mode = #tpu.pipeline_mode<synchronous>, transform_indices = @transform_8, window_bounds = array<i64: 1, 32>}, {transform_indices = @transform_9, window_bounds = array<i64: 8, 32>}]} {
    %c0 = arith.constant 0 : index
    %c0_0 = arith.constant 0 : index
    %0 = vector.load %arg1[%c0, %c0_0] : memref<8x32xf32, #tpu.memory_space<vmem>>, vector<8x32xf32>
    %c0_1 = arith.constant 0 : index
    %c0_2 = arith.constant 0 : index
    %1 = vector.load %arg3[%c0_1, %c0_2] : memref<32x128xf32, #tpu.memory_space<vmem>>, vector<32x128xf32>
    %cst = arith.constant dense<0.000000e+00> : vector<8x128xf32>
    %2 = tpu.matmul %0, %1, %cst {dimension_numbers = #tpu.dot_dimension_numbers<[1], [0], [0], [1], [0, 0, 1, 1], [], []>} : vector<8x32xf32>, vector<32x128xf32>, vector<8x128xf32> -> vector<8x128xf32>
    %c0_3 = arith.constant 0 : index
    %c0_4 = arith.constant 0 : index
    %3 = vector.load %arg2[%c0_3, %c0_4] : memref<8x32xf32, #tpu.memory_space<vmem>>, vector<8x32xf32>
    %c0_5 = arith.constant 0 : index
    %c0_6 = arith.constant 0 : index
    %4 = vector.load %arg4[%c0_5, %c0_6] : memref<32x128xf32, #tpu.memory_space<vmem>>, vector<32x128xf32>
    %cst_7 = arith.constant dense<0.000000e+00> : vector<8x128xf32>
    %5 = tpu.matmul %3, %4, %cst_7 {dimension_numbers = #tpu.dot_dimension_numbers<[1], [0], [0], [1], [0, 0, 1, 1], [], []>} : vector<8x32xf32>, vector<32x128xf32>, vector<8x128xf32> -> vector<8x128xf32>
    %6 = arith.addf %2, %5 : vector<8x128xf32>
    %c0_8 = arith.constant 0 : index
    %c0_9 = arith.constant 0 : index
    %7 = vector.load %arg5[%c0_8, %c0_9] : memref<1x128xf32, #tpu.memory_space<vmem>>, vector<1x128xf32>
    %8 = vector.broadcast %7 : vector<1x128xf32> to vector<8x128xf32>
    %9 = arith.addf %6, %8 : vector<8x128xf32>
    %cst_10 = arith.constant 0.000000e+00 : f32
    %10 = vector.broadcast %cst_10 : f32 to vector<8x128xf32>
    %11 = arith.cmpf ogt, %9, %10 : vector<8x128xf32>
    %12 = math.exp %9 : vector<8x128xf32>
    %cst_11 = arith.constant 1.000000e+00 : f32
    %13 = vector.broadcast %cst_11 : f32 to vector<8x128xf32>
    %14 = arith.subf %12, %13 : vector<8x128xf32>
    %15 = arith.select %11, %9, %14 : vector<8x128xi1>, vector<8x128xf32>
    %c0_12 = arith.constant 0 : index
    %c0_13 = arith.constant 0 : index
    %16 = vector.load %arg6[%c0_12, %c0_13] : memref<128x128xf32, #tpu.memory_space<vmem>>, vector<128x128xf32>
    %cst_14 = arith.constant dense<0.000000e+00> : vector<8x128xf32>
    %17 = tpu.matmul %15, %16, %cst_14 {dimension_numbers = #tpu.dot_dimension_numbers<[1], [0], [0], [1], [0, 0, 1, 1], [], []>} : vector<8x128xf32>, vector<128x128xf32>, vector<8x128xf32> -> vector<8x128xf32>
    %c0_15 = arith.constant 0 : index
    %c0_16 = arith.constant 0 : index
    %18 = vector.load %arg7[%c0_15, %c0_16] : memref<1x128xf32, #tpu.memory_space<vmem>>, vector<1x128xf32>
    %19 = vector.broadcast %18 : vector<1x128xf32> to vector<8x128xf32>
    %20 = arith.addf %17, %19 : vector<8x128xf32>
    %cst_17 = arith.constant 0.000000e+00 : f32
    %21 = vector.broadcast %cst_17 : f32 to vector<8x128xf32>
    %22 = arith.cmpf ogt, %20, %21 : vector<8x128xf32>
    %23 = math.exp %20 : vector<8x128xf32>
    %cst_18 = arith.constant 1.000000e+00 : f32
    %24 = vector.broadcast %cst_18 : f32 to vector<8x128xf32>
    %25 = arith.subf %23, %24 : vector<8x128xf32>
    %26 = arith.select %22, %20, %25 : vector<8x128xi1>, vector<8x128xf32>
    %c0_19 = arith.constant 0 : index
    %c0_20 = arith.constant 0 : index
    %27 = vector.load %arg8[%c0_19, %c0_20] : memref<128x32xf32, #tpu.memory_space<vmem>>, vector<128x32xf32>
    %cst_21 = arith.constant dense<0.000000e+00> : vector<8x32xf32>
    %28 = tpu.matmul %26, %27, %cst_21 {dimension_numbers = #tpu.dot_dimension_numbers<[1], [0], [0], [1], [0, 0, 1, 1], [], []>} : vector<8x128xf32>, vector<128x32xf32>, vector<8x32xf32> -> vector<8x32xf32>
    %c0_22 = arith.constant 0 : index
    %c0_23 = arith.constant 0 : index
    %29 = vector.load %arg9[%c0_22, %c0_23] : memref<1x32xf32, #tpu.memory_space<vmem>>, vector<1x32xf32>
    %30 = vector.broadcast %29 : vector<1x32xf32> to vector<8x32xf32>
    %31 = arith.addf %28, %30 : vector<8x32xf32>
    %c0_24 = arith.constant 0 : index
    %c0_25 = arith.constant 0 : index
    %32 = vector.load %arg10[%c0_24, %c0_25] : memref<8x32xf32, #tpu.memory_space<vmem>>, vector<8x32xf32>
    tpu.vector_store %arg10[%c0_24, %c0_25], %31 {strides = array<i32>} : memref<8x32xf32, #tpu.memory_space<vmem>>, vector<8x32xf32>,
    return
  }
  func.func @transform_0(%arg0: i32) -> (i32, i32) {
    %c0_i32 = arith.constant 0 : i32
    %c0_i32_0 = arith.constant 0 : i32
    return %arg0, %c0_i32 : i32, i32
  }
  func.func @transform_1(%arg0: i32) -> (i32, i32) {
    %c0_i32 = arith.constant 0 : i32
    %c0_i32_0 = arith.constant 0 : i32
    return %arg0, %c0_i32 : i32, i32
  }
  func.func @transform_2(%arg0: i32) -> (i32, i32) {
    %c0_i32 = arith.constant 0 : i32
    %c0_i32_0 = arith.constant 0 : i32
    %c0_i32_1 = arith.constant 0 : i32
    return %c0_i32, %c0_i32_0 : i32, i32
  }
  func.func @transform_3(%arg0: i32) -> (i32, i32) {
    %c0_i32 = arith.constant 0 : i32
    %c0_i32_0 = arith.constant 0 : i32
    %c0_i32_1 = arith.constant 0 : i32
    return %c0_i32, %c0_i32_0 : i32, i32
  }
  func.func @transform_4(%arg0: i32) -> (i32, i32) {
    %c0_i32 = arith.constant 0 : i32
    %c0_i32_0 = arith.constant 0 : i32
    %c0_i32_1 = arith.constant 0 : i32
    return %c0_i32, %c0_i32_0 : i32, i32
  }
  func.func @transform_5(%arg0: i32) -> (i32, i32) {
    %c0_i32 = arith.constant 0 : i32
    %c0_i32_0 = arith.constant 0 : i32
    %c0_i32_1 = arith.constant 0 : i32
    return %c0_i32, %c0_i32_0 : i32, i32
  }
  func.func @transform_6(%arg0: i32) -> (i32, i32) {
    %c0_i32 = arith.constant 0 : i32
    %c0_i32_0 = arith.constant 0 : i32
    %c0_i32_1 = arith.constant 0 : i32
    return %c0_i32, %c0_i32_0 : i32, i32
  }
  func.func @transform_7(%arg0: i32) -> (i32, i32) {
    %c0_i32 = arith.constant 0 : i32
    %c0_i32_0 = arith.constant 0 : i32
    %c0_i32_1 = arith.constant 0 : i32
    return %c0_i32, %c0_i32_0 : i32, i32
  }
  func.func @transform_8(%arg0: i32) -> (i32, i32) {
    %c0_i32 = arith.constant 0 : i32
    %c0_i32_0 = arith.constant 0 : i32
    %c0_i32_1 = arith.constant 0 : i32
    return %c0_i32, %c0_i32_0 : i32, i32
  }
  func.func @transform_9(%arg0: i32) -> (i32, i32) {
    %c0_i32 = arith.constant 0 : i32
    %c0_i32_0 = arith.constant 0 : i32
    return %arg0, %c0_i32 : i32, i32
  }
}

</mosaic_0001>

<bundles_post_ra>
// kernel: tpu_custom_call.1
= control target key start
LH: loop header
LB: loop body
LE: loop exit
PB: predicated region body
PF: predicated region fallthrough
CT: control target
= control target key end

     0   :  { %14 = vsyncpa [#allocation3], 0  ;;  %s917_s0 = inlined_call_operand.vmem [shape: f32[8,32], index: 0, kind: input, shape index: {}]   ;;  %s918_s1 = inlined_call_operand.vmem [shape: f32[8,32], index: 1, kind: input, shape index: {}]   ;;  %s919_s2 = inlined_call_operand.vmem [shape: f32[32,128], index: 2, kind: input, shape index: {}]   ;;  %s920_s3 = inlined_call_operand.hbm [shape: f32[32,128], index: 3, kind: input, shape index: {}]   ;;  %s921_s4 = inlined_call_operand.vmem [shape: f32[1,128], index: 4, kind: input, shape index: {}]   ;;  %s922_s5 = inlined_call_operand.vmem [shape: f32[128,128], index: 5, kind: input, shape index: {}]   ;;  %s923_s6 = inlined_call_operand.vmem [shape: f32[1,128], index: 6, kind: input, shape index: {}]   ;;  %s924_s7 = inlined_call_operand.vmem [shape: f32[128,32], index: 7, kind: input, shape index: {}]   ;;  %s925_s8 = inlined_call_operand.vmem [shape: f32[1,32], index: 8, kind: input, shape index: {}]   ;;  %s926_s9 = inlined_call_operand.hbm [shape: f32[8,32], index: 9, kind: output, shape index: {}]  }
   0x1   :  { %15 = vsyncpa [#allocation4], 0  ;;  %s686_s30 = smov [#allocation2]   ;;  %s638_s13 = scalar_lea.hbm %s920_s3, 512 }
   0x2   :  { %s27_s10 = sshll.u32 %s686_s30, 4  ;;  %p639_p0 = scmp.ne.s32.totalorder %s920_s3, %s638_s13  ;;  %s28_s10 = int_to_ptr.vmem [resolvable:$true] %s27_s10 }
   0x3   :  { %p642_p1 = scmp.lt.u32.totalorder %s638_s13, %s920_s3 }
   0x5   :  { %p644_p2 = pnand %p642_p1, %p639_p0 }
   0x7   :  { %647 = shalt.err (!%p644_p2)
}
   0x8   :  { %s648_s18 = scalar_lea.vmem %s28_s10, 512  ;;  %p653_p4 = scmp.lt.s32.totalorder %s28_s10, %s28_s10 }
   0x9   :  { %p649_p3 = scmp.ne.s32.totalorder %s28_s10, %s648_s18  ;;  %p654_p5 = scmp.lt.s32.totalorder %s648_s18, %s648_s18 }
   0xb   :  { %p655_p6 = por %p654_p5, %p653_p4 }
   0xd   :  { %p656_p7 = pnand %p655_p6, %p649_p3 }
   0xf   :  { %659 = shalt.err (!%p656_p7)
}
  0x10   :  { %s687_s19 = smov 128   ;;  %s688_s20 = smov 8  }
  0x11   :  { %33 = dma.hbm_to_vmem [thread:$0]  %s920_s3, 512, %s28_s10, [#allocation3], %s687_s19, %s687_s19, %s688_s20  }
  0x12   :  { %682 = dma.done.wait [#allocation3], 512  }
  0x13   :  { %683 = vsyncadd [#allocation3], 4294966784  ;;  %v689_v0 = vmov 0.0|0.0   ;;  %vm690_vm0 = vmmov 0   ;;  %v691_v1 = vmov 0.0   ;;  %v53_v2 = vld [vmem:[#allocation2] sm:$0xff] }
  0x14   :  { %567 = vmatprep.subr.bf16.mxu0 %v689_v0  ;;  %573 = vmatprep.subr.bf16.mxu1 %v689_v0  ;;  %v54_v3 = vld [vmem:[#allocation2 + $0x8] sm:$0xff]  ;;  %v48_v4 = vld [vmem:[%s919_s2] sm:$0xff]  ;;  %v55_v7 = vld [vmem:[#allocation2 + $0x10] sm:$0xff]  ;;  %vm57_vm1 = vcmask 261120   ;;  %s692_s25 = smov [#allocation5]  }
  0x15   :  { %483 = vmatprep.mubr.msk.f32.mxu0 %vm690_vm0, %v691_v1  ;;  %494 = vmatprep.mubr.msk.f32.mxu1 %vm690_vm0, %v691_v1  ;;  %v568_v5 = vpack.c.bf16 %v54_v3, %v53_v2  ;;  %v49_v6 = vld [vmem:[%s919_s2 + $0x8] sm:$0xff]  ;;  %v56_v8 = vld [vmem:[#allocation2 + $0x18] sm:$0xff]  ;;  %v50_v10 = vld [vmem:[%s919_s2 + $0x10] sm:$0xff]  ;;  %s415_s26 = sshll.u32 %s692_s25, 4  ;;  %s416_s26 = int_to_ptr.vmem [resolvable:$true] %s415_s26 }
  0x16   :  { %v574_v9 = vpack.c.bf16 %v49_v6, %v48_v4  ;;  %v51_v11 = vld [vmem:[%s919_s2 + $0x18] sm:$0xff]  ;;  %v571_v12 = vpack.c.bf16 %v56_v8, %v55_v7  ;;  %v217_v14 = vld [vmem:[%s922_s5] sm:$0xff]  ;;  %v218_v15 = vld [vmem:[%s922_s5 + $0x8] sm:$0xff]  ;;  %p665_p9 = scmp.lt.s32.totalorder %s416_s26, %s416_s26 }
  0x17   :  { %569 = vmatpush3.bf16.msra.mxu0 %v568_v5  ;;  %v577_v13 = vpack.c.bf16 %v51_v11, %v50_v10  ;;  %v52_v16 = vld [vmem:[%s918_s1] sm:$0xff]  ;;  %v580_v17 = vpack.c.bf16 %v218_v15, %v217_v14  ;;  %v219_v19 = vld [vmem:[%s922_s5 + $0x10] sm:$0xff]  ;;  %v220_v20 = vld [vmem:[%s922_s5 + $0x18] sm:$0xff] }
  0x18   :  { %575 = vmatpush3.bf16.msra.mxu1 %v574_v9  ;;  %570 = vmatprep.subr.bf16.mxu0 %v689_v0  ;;  %v47_v18 = vld [vmem:[%s917_s0] sm:$0xff]  ;;  %v583_v21 = vpack.c.bf16 %v220_v20, %v219_v19  ;;  %v222_v23 = vld [vmem:[%s922_s5 + $0x28] sm:$0xff]  ;;  %v223_v25 = vld [vmem:[%s922_s5 + $0x30] sm:$0xff] }
  0x19   :  { %576 = vmatprep.subr.bf16.mxu1 %v689_v0  ;;  %v221_v22 = vld [vmem:[%s922_s5 + $0x20] sm:$0xff]  ;;  %v224_v26 = vld [vmem:[%s922_s5 + $0x38] sm:$0xff]  ;;  %v226_v29 = vld [vmem:[%s922_s5 + $0x48] sm:$0xff] }
  0x1a   :  { %v586_v24 = vpack.c.bf16 %v222_v23, %v221_v22  ;;  %v589_v27 = vpack.c.bf16 %v224_v26, %v223_v25  ;;  %v225_v28 = vld [vmem:[%s922_s5 + $0x40] sm:$0xff]  ;;  %v227_v31 = vld [vmem:[%s922_s5 + $0x50] sm:$0xff]  ;;  %v228_v32 = vld [vmem:[%s922_s5 + $0x58] sm:$0xff] }
  0x1b   :  { %572 = vmatpush3.bf16.msra.mxu0 %v571_v12  ;;  %v592_v30 = vpack.c.bf16 %v226_v29, %v225_v28  ;;  %v229_v33 = vld [vmem:[%s922_s5 + $0x60] sm:$0xff]  ;;  %v595_v34 = vpack.c.bf16 %v228_v32, %v227_v31  ;;  %v230_v35 = vld [vmem:[%s922_s5 + $0x68] sm:$0xff]  ;;  %v231_v37 = vld [vmem:[%s922_s5 + $0x70] sm:$0xff] }
  0x1c   :  { %578 = vmatpush3.bf16.msra.mxu1 %v577_v13  ;;  %579 = vmatprep.subr.bf16.mxu0 %v689_v0  ;;  %v598_v36 = vpack.c.bf16 %v230_v35, %v229_v33  ;;  %v232_v38 = vld [vmem:[%s922_s5 + $0x78] sm:$0xff]  ;;  %v315_v40 = vld [vmem:[%s924_s7] sm:$0xff]  ;;  %v316_v41 = vld [vmem:[%s924_s7 + $0x8] sm:$0xff] }
  0x1d   :  { %603 = vmatprep.subr.bf16.mxu1 %v689_v0  ;;  %v601_v39 = vpack.c.bf16 %v232_v38, %v231_v37  ;;  %v317_v42 = vld [vmem:[%s924_s7 + $0x10] sm:$0xff]  ;;  %v604_v43 = vpack.c.bf16 %v316_v41, %v315_v40  ;;  %v318_v44 = vld [vmem:[%s924_s7 + $0x18] sm:$0xff]  ;;  %v319_v46 = vld [vmem:[%s924_s7 + $0x20] sm:$0xff] }
  0x1e   :  { %484 = vmatmul.mubr.msk.f32.vlgmr.msra.gmra.mrb[0].mxu0 %vm57_vm1, %v52_v16  ;;  %v607_v45 = vpack.c.bf16 %v318_v44, %v317_v42  ;;  %v320_v47 = vld [vmem:[%s924_s7 + $0x28] sm:$0xff]  ;;  %v426_v51 = vld [vmem:[%s921_s4] ss:$0 sm:$0xff]  ;;  %v321_v60 = vld [vmem:[%s924_s7 + $0x30] sm:$0xff] }
  0x1f   :  { %495 = vmatmul.mubr.msk.f32.vlgmr.msra.gmra.mrb[0].mxu1 %vm57_vm1, %v47_v18  ;;  %581 = vmatpush3.bf16.msra.mxu0 %v580_v17  ;;  %v610_v48 = vpack.c.bf16 %v320_v47, %v319_v46  ;;  %v322_v61 = vld [vmem:[%s924_s7 + $0x38] sm:$0xff]  ;;  %v323_v63 = vld [vmem:[%s924_s7 + $0x40] sm:$0xff]  ;;  %v325_v3 = vld [vmem:[%s924_s7 + $0x50] sm:$0xff] }
  0x20   :  { %582 = vmatprep.subr.bf16.mxu0 %v689_v0  ;;  %529 = vmatprep.mubr.msk.f32.mxu0 %vm690_vm0, %v691_v1  ;;  %v613_v62 = vpack.c.bf16 %v322_v61, %v321_v60  ;;  %v326_v4 = vld [vmem:[%s924_s7 + $0x58] sm:$0xff]  ;;  %v327_v5 = vld [vmem:[%s924_s7 + $0x60] sm:$0xff]  ;;  %v328_v7 = vld [vmem:[%s924_s7 + $0x68] sm:$0xff] }
  0x21   :  { %564 = vmatprep.mubr.msk.f32.mxu1 %vm690_vm0, %v691_v1  ;;  %605 = vmatpush3.bf16.msra.mxu1 %v604_v43  ;;  %v324_v1 = vld [vmem:[%s924_s7 + $0x48] sm:$0xff]  ;;  %v619_v6 = vpack.c.bf16 %v326_v4, %v325_v3  ;;  %v622_v8 = vpack.c.bf16 %v328_v7, %v327_v5  ;;  %v329_v9 = vld [vmem:[%s924_s7 + $0x70] sm:$0xff]  ;;  %v330_v10 = vld [vmem:[%s924_s7 + $0x78] sm:$0xff] }
  0x22   :  { %606 = vmatprep.subr.bf16.mxu1 %v689_v0  ;;  %v616_v2 = vpack.c.bf16 %v324_v1, %v323_v63  ;;  %v625_v11 = vpack.c.bf16 %v330_v10, %v329_v9  ;;  %v428_v12 = vld [vmem:[%s923_s6] ss:$0 sm:$0xff]  ;;  %s660_s6 = scalar_lea.vmem %s416_s26, 128 }
  0x23   :  { %584 = vmatpush3.bf16.msra.mxu0 %v583_v21  ;;  %v430_v20 = vld [vmem:[%s925_s8] ss:$0 sm:$0xff]  ;;  %p661_p8 = scmp.ne.s32.totalorder %s416_s26, %s660_s6  ;;  %p666_p10 = scmp.lt.s32.totalorder %s660_s6, %s660_s6 }
  0x24   :  { %585 = vmatprep.subr.bf16.mxu0 %v689_v0 }
  0x25   :  { %608 = vmatpush3.bf16.msra.mxu1 %v607_v45  ;;  %p667_p11 = por %p666_p10, %p665_p9 }
  0x26   :  { %609 = vmatprep.subr.bf16.mxu1 %v689_v0 }
  0x27   :  { %587 = vmatpush3.bf16.msra.mxu0 %v586_v24  ;;  %p668_p12 = pnand %p667_p11, %p661_p8 }
  0x28   :  { %588 = vmatprep.subr.bf16.mxu0 %v689_v0 }
  0x29   :  { %611 = vmatpush3.bf16.msra.mxu1 %v610_v48 }
  0x2a   :  { %612 = vmatprep.subr.bf16.mxu1 %v689_v0 }
  0x2b   :  { %590 = vmatpush3.bf16.msra.mxu0 %v589_v27 }
  0x2c   :  { %591 = vmatprep.subr.bf16.mxu0 %v689_v0 }
  0x2d   :  { %614 = vmatpush3.bf16.msra.mxu1 %v613_v62 }
  0x2e   :  { %615 = vmatprep.subr.bf16.mxu1 %v689_v0 }
  0x2f   :  { %593 = vmatpush3.bf16.msra.mxu0 %v592_v30 }
  0x30   :  { %594 = vmatprep.subr.bf16.mxu0 %v689_v0 }
  0x31   :  { %617 = vmatpush3.bf16.msra.mxu1 %v616_v2 }
  0x32   :  { %618 = vmatprep.subr.bf16.mxu1 %v689_v0 }
  0x33   :  { %596 = vmatpush3.bf16.msra.mxu0 %v595_v34 }
  0x34   :  { %597 = vmatprep.subr.bf16.mxu0 %v689_v0 }
  0x35   :  { %620 = vmatpush3.bf16.msra.mxu1 %v619_v6 }
  0x36   :  { %621 = vmatprep.subr.bf16.mxu1 %v689_v0 }
  0x37   :  { %599 = vmatpush3.bf16.msra.mxu0 %v598_v36 }
  0x38   :  { %600 = vmatprep.subr.bf16.mxu0 %v689_v0 }
  0x39   :  { %623 = vmatpush3.bf16.msra.mxu1 %v622_v8 }
  0x3a   :  { %624 = vmatprep.subr.bf16.mxu1 %v689_v0 }
  0x3b   :  { %602 = vmatpush3.bf16.msra.mxu0 %v601_v39 }
  0x3d   :  { %626 = vmatpush3.bf16.msra.mxu1 %v625_v11 }
  0xf1   :  { %v127_v49 = vpop.f32.mrb[0].mxu0 }
  0xf2   :  { %v200_v50 = vpop.f32.mrb[0].mxu1  ;;  %v485_v52 = vpop.f32.mrb[1].mxu0 }
  0xf3   :  { %v201_v53 = vadd.f32 %v200_v50, %v127_v49  ;;  %v496_v54 = vpop.f32.mrb[1].mxu1 }
  0xf5   :  { %v211_v55 = vadd.f32 %v426_v51, %v201_v53 }
  0xf7   :  { %v213_v56 = vmul.f32 1.442695, %v211_v55  ;;  %vm212_vm2 = vcmp.gt.f32.partialorder %v211_v55, 0.0 }
  0xf9   :  { %634 = vpow2.f32 %v213_v56 }
 0x103   :  { %v635_v57 = vpop.eup %634 }
 0x104   :  { %v427_v58 = vadd.f32 -1.0, %v635_v57 }
 0x106   :  { %v216_v59 = vsel %vm212_vm2, %v211_v55, %v427_v58 }
 0x107   :  { %530 = vmatmul.mubr.f32.vlgmr.msra.gmra.mrb[2].mxu0 %v216_v59 }
 0x1da   :  { %v306_v13 = vpop.f32.mrb[2].mxu0 }
 0x1db   :  { %v307_v14 = vadd.f32 %v428_v12, %v306_v13  ;;  %v531_v15 = vpop.f32.mrb[3].mxu0 }
 0x1dd   :  { %v311_v16 = vmul.f32 1.442695, %v307_v14  ;;  %vm310_vm3 = vcmp.gt.f32.partialorder %v307_v14, 0.0 }
 0x1df   :  { %636 = vpow2.f32 %v311_v16 }
 0x1e9   :  { %v637_v17 = vpop.eup %636 }
 0x1ea   :  { %v429_v18 = vadd.f32 -1.0, %v637_v17 }
 0x1ec   :  { %v314_v19 = vsel %vm310_vm3, %v307_v14, %v429_v18 }
 0x1ed   :  { %565 = vmatmul.mubr.f32.vlgmr.msra.gmra.mrb[2].mxu1 %v314_v19 }
 0x2c0   :  { %v404_v0 = vpop.f32.mrb[2].mxu1 }
 0x2c1   :  { %v405_v21 = vadd.f32 %v430_v20, %v404_v0  ;;  %v566_v22 = vpop.f32.mrb[3].mxu1 }
 0x2c3   :  { %408 = vst.msk [vmem:[#allocation5] sm:$0xff] %vm57_vm1, %v405_v21 }
 0x2c4   :  { %671 = shalt.err (!%p668_p12)
}
 0x2c5   :  { %s672_s29 = scalar_lea.hbm %s926_s9, 128 }
 0x2c6   :  { %p673_p13 = scmp.ne.s32.totalorder %s926_s9, %s672_s29  ;;  %p676_p0 = scmp.lt.u32.totalorder %s672_s29, %s926_s9 }
 0x2c8   :  { %p678_p1 = pnand %p676_p0, %p673_p13 }
 0x2ca   :  { %681 = shalt.err (!%p678_p1)
}
 0x2cb   :  { %418 = dma.vmem_to_hbm [thread:$0]  %s416_s26, 128, %s926_s9, [#allocation4]  }
 0x2cc   :  { %684 = dma.done.wait [#allocation4], 128  }
 0x2cd   :  { %685 = vsyncadd [#allocation4], 4294967168 }
 0x2ce   :  { %422 = vsyncpa [#allocation3], 1 }
 0x2cf   :  { %423 = vsyncpa [#allocation4], 1 }

</bundles_post_ra>
